<compile_context>
chip_gen: v7x
topology: tpu7x:2x2x1
jax: 0.10.0
libtpu: 0.0.40
codegen_flags: <defaults>
</compile_context>

<pallas_src>
import functools

import jax
import jax.numpy as jnp
from jax import lax
from jax.experimental import pallas as pl
from jax.experimental.pallas import tpu as pltpu

IN_FEATURES = 400
OUT_FEATURES = 2


def _round_up(n: int, m: int) -> int:
    return ((n + m - 1) // m) * m


def _cdiv(a: int, b: int) -> int:
    return -(-a // b)


def _choose_tile(B: int, tile_b: int) -> int:
    """Pick a lane-aligned (multiple of 128) batch tile.

    - At most `tile_b` rows and never below 128.
    - If the grid would be small (< 8 steps) and odd, shrink the tile so the
      step count is even (balances the 2 TensorCores on v7x; no effect on
      single-TC v5e/v6e).
    """
    tb = max(128, min(tile_b, _round_up(B, 128)))
    steps = _cdiv(B, tb)
    if 1 < steps < 8 and steps % 2 == 1:
        steps += 1
        tb = max(128, _round_up(_cdiv(B, steps), 128))
    return tb


def _linear_kernel(x_ref, w_ref, b_ref, o_ref):
    # x_ref: (TB, 400)  w_ref: (400, 2)  b_ref: (2, 1)  o_ref: (2, TB)
    # Compute the transposed output block so the last (lane) dim is TB (a
    # multiple of 128) -> unmasked, lane-dense stores. OUT=2 leaves the MXU
    # nearly idle, but the kernel is HBM-bound so that slack is free.
    acc = lax.dot_general(
        w_ref[...], x_ref[...],
        dimension_numbers=(((0,), (1,)), ((), ())),
        preferred_element_type=jnp.float32,
    )  # (OUT, TB)
    o_ref[...] = (acc + b_ref[...]).astype(o_ref.dtype)


@functools.partial(jax.jit, static_argnames=("tile_b",))
def amazon_classifier_forward(x, w_t, b, *, tile_b: int = 2048):
    """Forward pass of AmazonClassifier.

    x:   (B, 400) float32
    w_t: (400, 2) float32   (PyTorch weight (2, 400) pre-transposed)
    b:   (2,)     float32
    returns (B, 2) float32

    Note: raise tile_b to 4096 on v6e/v7x for very large batches; keep the
    default (2048) on v5e unless vmem_limit_bytes is also raised.
    """
    B, K = x.shape
    assert K == IN_FEATURES

    tb = _choose_tile(B, tile_b)
    grid = (pl.cdiv(B, tb),)

    b_col = b.astype(jnp.float32).reshape(OUT_FEATURES, 1)

    cost = pl.CostEstimate(
        flops=2 * B * IN_FEATURES * OUT_FEATURES,
        transcendentals=0,
        bytes_accessed=(B * IN_FEATURES
                        + IN_FEATURES * OUT_FEATURES
                        + OUT_FEATURES
                        + OUT_FEATURES * B) * 4,
    )

    out_t = pl.pallas_call(
        _linear_kernel,
        out_shape=jax.ShapeDtypeStruct((OUT_FEATURES, B), jnp.float32),
        grid_spec=pltpu.PrefetchScalarGridSpec(
            num_scalar_prefetch=0,
            grid=grid,
            in_specs=[
                # x streamed directly from HBM (no batch pad, no K pad):
                # K block dim 400 == full array dim, so the (8,128) rule is
                # satisfied; Mosaic lane-pads to 512 inside VMEM only.
                pl.BlockSpec((tb, IN_FEATURES), lambda i: (i, 0)),
                # Weight & bias: constant index_map -> resident in VMEM.
                pl.BlockSpec((IN_FEATURES, OUT_FEATURES), lambda i: (0, 0)),
                pl.BlockSpec((OUT_FEATURES, 1), lambda i: (0, 0)),
            ],
            out_specs=pl.BlockSpec((OUT_FEATURES, tb), lambda i: (0, i)),
        ),
        compiler_params=pltpu.CompilerParams(
            dimension_semantics=("parallel",),
        ),
        cost_estimate=cost,
    )(x.astype(jnp.float32), w_t.astype(jnp.float32), b_col)

    # Back to the module's (B, 2) layout. (Consumers that accept (2, B) can
    # take `out_t` directly and skip this transpose.)
    return out_t.T


def init_params(key):
    """Deterministic init mimicking nn.Linear default (uniform +/- 1/sqrt(fan_in))."""
    kw, kb = jax.random.split(key)
    bound = 1.0 / jnp.sqrt(jnp.float32(IN_FEATURES))
    # PyTorch stores weight as (out, in) = (2, 400); keep the transposed
    # (in, out) = (400, 2) layout for the kernel's row-major contraction.
    w_t = jax.random.uniform(
        kw, (IN_FEATURES, OUT_FEATURES), jnp.float32, -bound, bound
    )
    b = jax.random.uniform(kb, (OUT_FEATURES,), jnp.float32, -bound, bound)
    return w_t, b


if __name__ == "__main__":
    key = jax.random.PRNGKey(0)
    k_x, k_x2, k_p = jax.random.split(key, 3)
    w_t, b = init_params(k_p)

    # Small demo batch; NOT a multiple of the tile -- exercises the
    # partial-last-block (OOB-masked) path.
    B = 8
    x = jax.random.normal(k_x, (B, IN_FEATURES), jnp.float32)
    y = jax.block_until_ready(amazon_classifier_forward(x, w_t, b))
    y_ref = x @ w_t + b[None, :]
    assert y.shape == (B, OUT_FEATURES)
    assert jnp.allclose(y, y_ref, atol=1e-5, rtol=1e-5), "mismatch vs reference (B=8)"

    # Second small case: multiple grid steps with a ragged tail (tile_b=128).
    B2 = 300
    x2 = jax.random.normal(k_x2, (B2, IN_FEATURES), jnp.float32)
    y2 = jax.block_until_ready(amazon_classifier_forward(x2, w_t, b, tile_b=128))
    y2_ref = x2 @ w_t + b[None, :]
    assert y2.shape == (B2, OUT_FEATURES)
    assert jnp.allclose(y2, y2_ref, atol=1e-5, rtol=1e-5), "mismatch vs reference (B=300)"

    print("KERNEL_OK")
</pallas_src>

<mosaic_0001>
module attributes {stable_mosaic.version = 11 : i64} {
  func.func @_linear_kernel(%arg0: i32, %arg1: memref<128x400xf32, #tpu.memory_space<vmem>>, %arg2: memref<400x2xf32, #tpu.memory_space<vmem>>, %arg3: memref<2x1xf32, #tpu.memory_space<vmem>>, %arg4: memref<2x128xf32, #tpu.memory_space<vmem>>) attributes {dimension_semantics = [#tpu.dimension_semantics<parallel>], iteration_bounds = array<i64: 1>, scalar_prefetch = 0 : i64, scratch_operands = 0 : i64, tpu.core_type = #tpu.core_type<tc>, window_params = [{transform_indices = @transform_0, window_bounds = array<i64: 128, 400>}, {pipeline_mode = #tpu.pipeline_mode<synchronous>, transform_indices = @transform_1, window_bounds = array<i64: 400, 2>}, {pipeline_mode = #tpu.pipeline_mode<synchronous>, transform_indices = @transform_2, window_bounds = array<i64: 2, 1>}, {transform_indices = @transform_3, window_bounds = array<i64: 2, 128>}]} {
    %c0 = arith.constant 0 : index
    %c0_0 = arith.constant 0 : index
    %0 = vector.load %arg2[%c0, %c0_0] : memref<400x2xf32, #tpu.memory_space<vmem>>, vector<400x2xf32>
    %c0_1 = arith.constant 0 : index
    %c0_2 = arith.constant 0 : index
    %1 = vector.load %arg1[%c0_1, %c0_2] : memref<128x400xf32, #tpu.memory_space<vmem>>, vector<128x400xf32>
    %cst = arith.constant dense<0.000000e+00> : vector<2x128xf32>
    %2 = tpu.matmul %0, %1, %cst {dimension_numbers = #tpu.dot_dimension_numbers<[0], [1], [1], [0], [0, 1, 1, 0], [], []>} : vector<400x2xf32>, vector<128x400xf32>, vector<2x128xf32> -> vector<2x128xf32>
    %c0_3 = arith.constant 0 : index
    %c0_4 = arith.constant 0 : index
    %3 = vector.load %arg3[%c0_3, %c0_4] : memref<2x1xf32, #tpu.memory_space<vmem>>, vector<2x1xf32>
    %4 = vector.broadcast %3 : vector<2x1xf32> to vector<2x128xf32>
    %5 = arith.addf %2, %4 : vector<2x128xf32>
    %c0_5 = arith.constant 0 : index
    %c0_6 = arith.constant 0 : index
    %6 = vector.load %arg4[%c0_5, %c0_6] : memref<2x128xf32, #tpu.memory_space<vmem>>, vector<2x128xf32>
    tpu.vector_store %arg4[%c0_5, %c0_6], %5 {strides = array<i32>} : memref<2x128xf32, #tpu.memory_space<vmem>>, vector<2x128xf32>,
    return
  }
  func.func @transform_0(%arg0: i32) -> (i32, i32) {
    %c0_i32 = arith.constant 0 : i32
    %c0_i32_0 = arith.constant 0 : i32
    return %arg0, %c0_i32 : i32, i32
  }
  func.func @transform_1(%arg0: i32) -> (i32, i32) {
    %c0_i32 = arith.constant 0 : i32
    %c0_i32_0 = arith.constant 0 : i32
    %c0_i32_1 = arith.constant 0 : i32
    return %c0_i32, %c0_i32_0 : i32, i32
  }
  func.func @transform_2(%arg0: i32) -> (i32, i32) {
    %c0_i32 = arith.constant 0 : i32
    %c0_i32_0 = arith.constant 0 : i32
    %c0_i32_1 = arith.constant 0 : i32
    return %c0_i32, %c0_i32_0 : i32, i32
  }
  func.func @transform_3(%arg0: i32) -> (i32, i32) {
    %c0_i32 = arith.constant 0 : i32
    %c0_i32_0 = arith.constant 0 : i32
    return %c0_i32, %arg0 : i32, i32
  }
}

</mosaic_0001>

<bundles_post_ra>
// kernel: amazon_classifier_forward.1
= control target key start
LH: loop header
LB: loop body
LE: loop exit
PB: predicated region body
PF: predicated region fallthrough
CT: control target
= control target key end

     0   :  { %vm263_vm0 = vcmask 130048   ;;  %s1028_s0 = inlined_call_operand.vmem [shape: f32[8,400], index: 0, kind: input, shape index: {}]   ;;  %s1029_s1 = inlined_call_operand.vmem [shape: f32[400,2], index: 1, kind: input, shape index: {}]   ;;  %s1030_s2 = inlined_call_operand.vmem [shape: f32[2,1], index: 2, kind: input, shape index: {}]   ;;  %s1031_s3 = inlined_call_operand.hbm [shape: f32[2,8], index: 3, kind: output, shape index: {}]  }
   0x1   :  { %v63_v0 = vld [vmem:[%s1029_s1 + $0x180] sm:$0xff]  ;;  %v16_v4 = vld [vmem:[%s1029_s1 + $0x8] sm:$0xff]  ;;  %v17_v8 = vld [vmem:[%s1029_s1 + $0x10] sm:$0xff] }
   0x2   :  { %v15_v1 = vld [vmem:[%s1029_s1] sm:$0xff]  ;;  %231 = vxpose.xlu1.b32.start [1/2] (short) (narrow) %v63_v0, 8  ;;  %v32_v5 = vld [vmem:[%s1029_s1 + $0x88] sm:$0xff]  ;;  %v33_v9 = vld [vmem:[%s1029_s1 + $0x90] sm:$0xff] }
   0x3   :  { %v31_v2 = vld [vmem:[%s1029_s1 + $0x80] sm:$0xff]  ;;  %v64_v6 = vld [vmem:[%s1029_s1 + $0x188] sm:$0xff]  ;;  %v566_v7 = vpack.i.bf16 %v16_v4, %v32_v5  ;;  %v568_v11 = vpack.i.bf16 %v17_v8, %v33_v9  ;;  %v18_v12 = vld [vmem:[%s1029_s1 + $0x18] sm:$0xff] }
   0x4   :  { %v564_v3 = vpack.i.bf16 %v15_v1, %v31_v2  ;;  %v47_v10 = vld [vmem:[%s1029_s1 + $0x100] sm:$0xff]  ;;  %v34_v13 = vld [vmem:[%s1029_s1 + $0x98] sm:$0xff]  ;;  %v48_v14 = vld [vmem:[%s1029_s1 + $0x108] sm:$0xff] }
   0x5   :  { %v570_v15 = vpack.i.bf16 %v18_v12, %v34_v13  ;;  %v19_v16 = vld [vmem:[%s1029_s1 + $0x20] sm:$0xff]  ;;  %v49_v18 = vld [vmem:[%s1029_s1 + $0x110] sm:$0xff]  ;;  %v50_v20 = vld [vmem:[%s1029_s1 + $0x118] sm:$0xff] }
   0x6   :  { %565 = vxpose.xlu0.b32.start [1/16] (narrow) %v564_v3, 8  ;;  %232 = vxpose.xlu1.b32.end [2/2] (short) (narrow) %v64_v6, 8  ;;  %v35_v17 = vld [vmem:[%s1029_s1 + $0xa0] sm:$0xff]  ;;  %v20_v21 = vld [vmem:[%s1029_s1 + $0x28] sm:$0xff]  ;;  %v68_v29 = vld [vmem:[%s1028_s0 + $0x18] sm:$0xff] }
   0x7   :  { %v572_v19 = vpack.i.bf16 %v19_v16, %v35_v17  ;;  %v36_v22 = vld [vmem:[%s1029_s1 + $0xa8] sm:$0xff]  ;;  %v65_v25 = vld [vmem:[%s1028_s0] sm:$0xff]  ;;  %v72_v30 = vld [vmem:[%s1028_s0 + $0x38] sm:$0xff] }
   0x8   :  { %v66_v23 = vld [vmem:[%s1028_s0 + $0x8] sm:$0xff]  ;;  %v69_v26 = vld [vmem:[%s1028_s0 + $0x20] sm:$0xff]  ;;  %vm722_vm1 = vmpackc.low %vm263_vm0, %vm263_vm0  ;;  %v574_v32 = vpack.i.bf16 %v20_v21, %v36_v22  ;;  %v519_v33 = vpack.c.bf16 %v72_v30, %v68_v29 }
   0x9   :  { %v70_v24 = vld [vmem:[%s1028_s0 + $0x28] sm:$0xff]  ;;  %v489_v28 = vpack.c.bf16 %v69_v26, %v65_v25  ;;  %v67_v34 = vld [vmem:[%s1028_s0 + $0x10] sm:$0xff]  ;;  %v76_v42 = vld [vmem:[%s1028_s0 + $0x58] sm:$0xff] }
   0xa   :  { %567 = vxpose.xlu0.b32.cont [2/16] (narrow) %v566_v7, 8  ;;  %199 = vxpose.xlu1.b32.start [1/16] (narrow) %v47_v10, 8  ;;  %v487_v27 = vpack.c.bf16 %v70_v24, %v66_v23  ;;  %v71_v35 = vld [vmem:[%s1028_s0 + $0x30] sm:$0xff]  ;;  %v74_v36 = vld [vmem:[%s1028_s0 + $0x48] sm:$0xff]  ;;  %v80_v43 = vld [vmem:[%s1028_s0 + $0x78] sm:$0xff] }
   0xb   :  { %v21_v37 = vld [vmem:[%s1029_s1 + $0x30] sm:$0xff]  ;;  %v522_v39 = vpack.c.bf16 %v71_v35, %v67_v34  ;;  %v78_v40 = vld [vmem:[%s1028_s0 + $0x68] sm:$0xff]  ;;  %v51_v44 = vld [vmem:[%s1029_s1 + $0x120] sm:$0xff]  ;;  %521 = vmatprep.subr.msk.bf16.mxu0 %vm722_vm1, %v519_v33  ;;  %v524_v47 = vpack.c.bf16 %v80_v43, %v76_v42 }
   0xc   :  { %v37_v38 = vld [vmem:[%s1029_s1 + $0xb0] sm:$0xff]  ;;  %488 = vmatprep.subr.bf16.mxu1 %v487_v27  ;;  %v491_v41 = vpack.c.bf16 %v78_v40, %v74_v36  ;;  %v73_v45 = vld [vmem:[%s1028_s0 + $0x40] sm:$0xff]  ;;  %v22_v49 = vld [vmem:[%s1029_s1 + $0x38] sm:$0xff] }
   0xd   :  { %490 = vmatpush1.bf16.xpose.msra.mxu1 %v489_v28  ;;  %v77_v46 = vld [vmem:[%s1028_s0 + $0x60] sm:$0xff]  ;;  %v576_v48 = vpack.i.bf16 %v21_v37, %v37_v38  ;;  %523 = vmatpush1.bf16.xpose.msra.mxu0 %v522_v39  ;;  %v82_v50 = vld [vmem:[%s1028_s0 + $0x88] sm:$0xff]  ;;  %v38_v52 = vld [vmem:[%s1029_s1 + $0xb8] sm:$0xff] }
   0xe   :  { %569 = vxpose.xlu0.b32.cont [3/16] (narrow) %v568_v11, 8  ;;  %200 = vxpose.xlu1.b32.cont [2/16] (narrow) %v48_v14, 8  ;;  %v86_v51 = vld [vmem:[%s1028_s0 + $0xa8] sm:$0xff]  ;;  %v75_v53 = vld [vmem:[%s1028_s0 + $0x50] sm:$0xff]  ;;  %v493_v55 = vpack.c.bf16 %v77_v46, %v73_v45  ;;  %v84_v56 = vld [vmem:[%s1028_s0 + $0x98] sm:$0xff]  ;;  %v578_v60 = vpack.i.bf16 %v22_v49, %v38_v52 }
   0xf   :  { %492 = vmatprep.subr.bf16.mxu1 %v491_v41  ;;  %526 = vmatprep.subr.msk.bf16.mxu0 %vm722_vm1, %v524_v47  ;;  %v79_v54 = vld [vmem:[%s1028_s0 + $0x70] sm:$0xff]  ;;  %v88_v57 = vld [vmem:[%s1028_s0 + $0xb8] sm:$0xff]  ;;  %v52_v58 = vld [vmem:[%s1029_s1 + $0x128] sm:$0xff]  ;;  %v495_v59 = vpack.c.bf16 %v86_v51, %v82_v50 }
  0x10   :  { %v527_v61 = vpack.c.bf16 %v79_v54, %v75_v53  ;;  %v23_v62 = vld [vmem:[%s1029_s1 + $0x40] sm:$0xff]  ;;  %v529_v0 = vpack.c.bf16 %v88_v57, %v84_v56  ;;  %v53_v1 = vld [vmem:[%s1029_s1 + $0x130] sm:$0xff]  ;;  %v24_v5 = vld [vmem:[%s1029_s1 + $0x48] sm:$0xff] }
  0x11   :  { %v39_v63 = vld [vmem:[%s1029_s1 + $0xc0] sm:$0xff]  ;;  %v90_v6 = vld [vmem:[%s1028_s0 + $0xc8] sm:$0xff]  ;;  %v83_v9 = vld [vmem:[%s1028_s0 + $0x90] sm:$0xff] }
  0x12   :  { %571 = vxpose.xlu0.b32.cont [4/16] (narrow) %v570_v15, 8  ;;  %201 = vxpose.xlu1.b32.cont [3/16] (narrow) %v49_v18, 8  ;;  %v81_v2 = vld [vmem:[%s1028_s0 + $0x80] sm:$0xff]  ;;  %v580_v4 = vpack.i.bf16 %v23_v62, %v39_v63  ;;  %v94_v7 = vld [vmem:[%s1028_s0 + $0xe8] sm:$0xff]  ;;  %v87_v10 = vld [vmem:[%s1028_s0 + $0xb0] sm:$0xff] }
  0x13   :  { %v85_v3 = vld [vmem:[%s1028_s0 + $0xa0] sm:$0xff]  ;;  %v40_v8 = vld [vmem:[%s1029_s1 + $0xc8] sm:$0xff]  ;;  %v92_v12 = vld [vmem:[%s1028_s0 + $0xd8] sm:$0xff]  ;;  %v499_v15 = vpack.c.bf16 %v94_v7, %v90_v6  ;;  %v532_v17 = vpack.c.bf16 %v87_v10, %v83_v9 }
  0x14   :  { %v497_v11 = vpack.c.bf16 %v85_v3, %v81_v2  ;;  %v96_v13 = vld [vmem:[%s1028_s0 + $0xf8] sm:$0xff]  ;;  %v582_v16 = vpack.i.bf16 %v24_v5, %v40_v8  ;;  %v25_v18 = vld [vmem:[%s1029_s1 + $0x50] sm:$0xff]  ;;  %v55_v21 = vld [vmem:[%s1029_s1 + $0x140] sm:$0xff] }
  0x15   :  { %494 = vmatpush1.bf16.xpose.msra.mxu1 %v493_v55  ;;  %528 = vmatpush1.bf16.xpose.msra.mxu0 %v527_v61  ;;  %v54_v14 = vld [vmem:[%s1029_s1 + $0x138] sm:$0xff]  ;;  %v89_v22 = vld [vmem:[%s1028_s0 + $0xc0] sm:$0xff] }
  0x16   :  { %573 = vxpose.xlu0.b32.cont [5/16] (narrow) %v572_v19, 8  ;;  %202 = vxpose.xlu1.b32.cont [4/16] (narrow) %v50_v20, 8  ;;  %v41_v19 = vld [vmem:[%s1029_s1 + $0xd0] sm:$0xff]  ;;  %v534_v20 = vpack.c.bf16 %v96_v13, %v92_v12  ;;  %v93_v23 = vld [vmem:[%s1028_s0 + $0xe0] sm:$0xff] }
  0x17   :  { %496 = vmatprep.subr.bf16.mxu1 %v495_v59  ;;  %531 = vmatprep.subr.msk.bf16.mxu0 %vm722_vm1, %v529_v0 }
  0x1a   :  { %575 = vxpose.xlu0.b32.cont [6/16] (narrow) %v574_v32, 8  ;;  %203 = vxpose.xlu1.b32.cont [5/16] (narrow) %v51_v44, 8 }
  0x1d   :  { %498 = vmatpush1.bf16.xpose.msra.mxu1 %v497_v11 }
  0x1e   :  { %577 = vxpose.xlu0.b32.cont [7/16] (narrow) %v576_v48, 8  ;;  %204 = vxpose.xlu1.b32.cont [6/16] (narrow) %v52_v58, 8 }
  0x1f   :  { %500 = vmatprep.subr.bf16.mxu1 %v499_v15 }
  0x22   :  { %579 = vxpose.xlu0.b32.cont [8/16] (narrow) %v578_v60, 8  ;;  %205 = vxpose.xlu1.b32.cont [7/16] (narrow) %v53_v1, 8 }
  0x26   :  { %581 = vxpose.xlu0.b32.cont [9/16] (narrow) %v580_v4, 8  ;;  %206 = vxpose.xlu1.b32.cont [8/16] (narrow) %v54_v14, 8 }
  0x27   :  { %8 = vsyncpa [#allocation3], 0  ;;  %v584_v24 = vpack.i.bf16 %v25_v18, %v41_v19  ;;  %v26_v25 = vld [vmem:[%s1029_s1 + $0x58] sm:$0xff]  ;;  %533 = vmatpush1.bf16.xpose.msra.mxu0 %v532_v17  ;;  %v98_v26 = vld [vmem:[%s1028_s0 + $0x108] sm:$0xff]  ;;  %v501_v32 = vpack.c.bf16 %v93_v23, %v89_v22 }
  0x28   :  { %v102_v27 = vld [vmem:[%s1028_s0 + $0x128] sm:$0xff]  ;;  %v42_v28 = vld [vmem:[%s1029_s1 + $0xd8] sm:$0xff]  ;;  %536 = vmatprep.subr.msk.bf16.mxu0 %vm722_vm1, %v534_v20  ;;  %v91_v29 = vld [vmem:[%s1028_s0 + $0xd0] sm:$0xff] }
  0x29   :  { %v95_v30 = vld [vmem:[%s1028_s0 + $0xf0] sm:$0xff]  ;;  %v100_v33 = vld [vmem:[%s1028_s0 + $0x118] sm:$0xff]  ;;  %v56_v35 = vld [vmem:[%s1029_s1 + $0x148] sm:$0xff]  ;;  %v503_v36 = vpack.c.bf16 %v102_v27, %v98_v26  ;;  %v586_v37 = vpack.i.bf16 %v26_v25, %v42_v28  ;;  %502 = vmatpush1.bf16.xpose.msra.mxu1 %v501_v32 }
  0x2a   :  { %583 = vxpose.xlu0.b32.cont [10/16] (narrow) %v582_v16, 8  ;;  %207 = vxpose.xlu1.b32.cont [9/16] (narrow) %v55_v21, 8  ;;  %v104_v34 = vld [vmem:[%s1028_s0 + $0x138] sm:$0xff]  ;;  %v537_v38 = vpack.c.bf16 %v95_v30, %v91_v29  ;;  %v27_v39 = vld [vmem:[%s1029_s1 + $0x60] sm:$0xff]  ;;  %v57_v42 = vld [vmem:[%s1029_s1 + $0x150] sm:$0xff] }
  0x2b   :  { %v43_v40 = vld [vmem:[%s1029_s1 + $0xe0] sm:$0xff]  ;;  %v539_v41 = vpack.c.bf16 %v104_v34, %v100_v33  ;;  %504 = vmatprep.subr.bf16.mxu1 %v503_v36  ;;  %v28_v46 = vld [vmem:[%s1029_s1 + $0x68] sm:$0xff]  ;;  %v99_v50 = vld [vmem:[%s1028_s0 + $0x110] sm:$0xff] }
  0x2c   :  { %v97_v43 = vld [vmem:[%s1028_s0 + $0x100] sm:$0xff]  ;;  %v588_v45 = vpack.i.bf16 %v27_v39, %v43_v40  ;;  %v106_v47 = vld [vmem:[%s1028_s0 + $0x148] sm:$0xff]  ;;  %v103_v51 = vld [vmem:[%s1028_s0 + $0x130] sm:$0xff] }
  0x2d   :  { %v101_v44 = vld [vmem:[%s1028_s0 + $0x120] sm:$0xff]  ;;  %v110_v48 = vld [vmem:[%s1028_s0 + $0x168] sm:$0xff]  ;;  %v108_v53 = vld [vmem:[%s1028_s0 + $0x158] sm:$0xff]  ;;  %v542_v58 = vpack.c.bf16 %v103_v51, %v99_v50 }
  0x2e   :  { %585 = vxpose.xlu0.b32.cont [11/16] (narrow) %v584_v24, 8  ;;  %208 = vxpose.xlu1.b32.cont [10/16] (narrow) %v56_v35, 8  ;;  %v44_v49 = vld [vmem:[%s1029_s1 + $0xe8] sm:$0xff]  ;;  %v505_v52 = vpack.c.bf16 %v101_v44, %v97_v43  ;;  %v112_v54 = vld [vmem:[%s1028_s0 + $0x178] sm:$0xff]  ;;  %v507_v56 = vpack.c.bf16 %v110_v48, %v106_v47  ;;  %v29_v59 = vld [vmem:[%s1029_s1 + $0x70] sm:$0xff] }
  0x2f   :  { %538 = vmatpush1.bf16.xpose.msra.mxu0 %v537_v38  ;;  %v58_v55 = vld [vmem:[%s1029_s1 + $0x158] sm:$0xff]  ;;  %v590_v57 = vpack.i.bf16 %v28_v46, %v44_v49  ;;  %v45_v60 = vld [vmem:[%s1029_s1 + $0xf0] sm:$0xff]  ;;  %v544_v61 = vpack.c.bf16 %v112_v54, %v108_v53  ;;  %v59_v62 = vld [vmem:[%s1029_s1 + $0x160] sm:$0xff]  ;;  %v626_v38 = vmov 0  }
  0x30   :  { %541 = vmatprep.subr.msk.bf16.mxu0 %vm722_vm1, %v539_v41  ;;  %v105_v63 = vld [vmem:[%s1028_s0 + $0x140] sm:$0xff]  ;;  %v592_v1 = vpack.i.bf16 %v29_v59, %v45_v60  ;;  %v30_v2 = vld [vmem:[%s1029_s1 + $0x78] sm:$0xff]  ;;  %v114_v3 = vld [vmem:[%s1028_s0 + $0x188] sm:$0xff] }
  0x31   :  { %506 = vmatpush1.bf16.xpose.msra.mxu1 %v505_v52  ;;  %v109_v0 = vld [vmem:[%s1028_s0 + $0x160] sm:$0xff]  ;;  %v118_v4 = vld [vmem:[%s1028_s0 + $0x1a8] sm:$0xff]  ;;  %v46_v5 = vld [vmem:[%s1029_s1 + $0xf8] sm:$0xff] }
  0x32   :  { %587 = vxpose.xlu0.b32.cont [12/16] (narrow) %v586_v37, 8  ;;  %209 = vxpose.xlu1.b32.cont [11/16] (narrow) %v57_v42, 8  ;;  %v107_v6 = vld [vmem:[%s1028_s0 + $0x150] sm:$0xff]  ;;  %v509_v8 = vpack.c.bf16 %v109_v0, %v105_v63  ;;  %v116_v9 = vld [vmem:[%s1028_s0 + $0x198] sm:$0xff]  ;;  %v60_v11 = vld [vmem:[%s1029_s1 + $0x168] sm:$0xff]  ;;  %v511_v12 = vpack.c.bf16 %v118_v4, %v114_v3  ;;  %v594_v13 = vpack.i.bf16 %v30_v2, %v46_v5 }
  0x33   :  { %508 = vmatprep.subr.bf16.mxu1 %v507_v56  ;;  %v111_v7 = vld [vmem:[%s1028_s0 + $0x170] sm:$0xff]  ;;  %v120_v10 = vld [vmem:[%s1028_s0 + $0x1b8] sm:$0xff]  ;;  %v113_v17 = vld [vmem:[%s1028_s0 + $0x180] sm:$0xff] }
  0x34   :  { %v547_v14 = vpack.c.bf16 %v111_v7, %v107_v6  ;;  %v549_v15 = vpack.c.bf16 %v120_v10, %v116_v9  ;;  %v61_v16 = vld [vmem:[%s1029_s1 + $0x170] sm:$0xff]  ;;  %v117_v18 = vld [vmem:[%s1028_s0 + $0x1a0] sm:$0xff]  ;;  %v122_v19 = vld [vmem:[%s1028_s0 + $0x1c8] sm:$0xff] }
  0x35   :  { %v126_v20 = vld [vmem:[%s1028_s0 + $0x1e8] sm:$0xff]  ;;  %v115_v21 = vld [vmem:[%s1028_s0 + $0x190] sm:$0xff]  ;;  %v513_v23 = vpack.c.bf16 %v117_v18, %v113_v17  ;;  %v124_v24 = vld [vmem:[%s1028_s0 + $0x1d8] sm:$0xff] }
  0x36   :  { %589 = vxpose.xlu0.b32.cont [13/16] (narrow) %v588_v45, 8  ;;  %210 = vxpose.xlu1.b32.cont [12/16] (narrow) %v58_v55, 8  ;;  %v119_v22 = vld [vmem:[%s1028_s0 + $0x1b0] sm:$0xff]  ;;  %v128_v25 = vld [vmem:[%s1028_s0 + $0x1f8] sm:$0xff]  ;;  %v515_v27 = vpack.c.bf16 %v126_v20, %v122_v19  ;;  %v121_v30 = vld [vmem:[%s1028_s0 + $0x1c0] sm:$0xff] }
  0x37   :  { %543 = vmatpush1.bf16.xpose.msra.mxu0 %v542_v58  ;;  %v62_v26 = vld [vmem:[%s1029_s1 + $0x178] sm:$0xff]  ;;  %v552_v28 = vpack.c.bf16 %v119_v22, %v115_v21  ;;  %v554_v29 = vpack.c.bf16 %v128_v25, %v124_v24  ;;  %v125_v32 = vld [vmem:[%s1028_s0 + $0x1e0] sm:$0xff]  ;;  %v123_v33 = vld [vmem:[%s1028_s0 + $0x1d0] sm:$0xff] }
  0x38   :  { %546 = vmatprep.subr.msk.bf16.mxu0 %vm722_vm1, %v544_v61  ;;  %v127_v34 = vld [vmem:[%s1028_s0 + $0x1f0] sm:$0xff]  ;;  %v517_v35 = vpack.c.bf16 %v125_v32, %v121_v30  ;;  %v129_v37 = vld [vmem:[%s1030_s2] sm:$0x3]  ;;  %s627_s0 = smov [#allocation2]  }
  0x39   :  { %510 = vmatpush1.bf16.xpose.msra.mxu1 %v509_v8  ;;  %v557_v36 = vpack.c.bf16 %v127_v34, %v123_v33  ;;  %s462_s25 = sshll.u32 %s627_s0, 4  ;;  %s463_s25 = int_to_ptr.vmem [resolvable:$true] %s462_s25 }
  0x3a   :  { %591 = vxpose.xlu0.b32.cont [14/16] (narrow) %v590_v57, 8  ;;  %211 = vxpose.xlu1.b32.cont [13/16] (narrow) %v59_v62, 8  ;;  %s602_s2 = scalar_lea.vmem %s463_s25, 32  ;;  %p607_p1 = scmp.lt.s32.totalorder %s463_s25, %s463_s25 }
  0x3b   :  { %512 = vmatprep.subr.bf16.mxu1 %v511_v12  ;;  %p603_p0 = scmp.ne.s32.totalorder %s463_s25, %s602_s2  ;;  %p608_p2 = scmp.lt.s32.totalorder %s602_s2, %s602_s2 }
  0x3d   :  { %p609_p3 = por %p608_p2, %p607_p1 }
  0x3e   :  { %593 = vxpose.xlu0.b32.cont [15/16] (narrow) %v592_v1, 8  ;;  %212 = vxpose.xlu1.b32.cont [14/16] (narrow) %v60_v11, 8 }
  0x3f   :  { %548 = vmatpush1.bf16.xpose.msra.mxu0 %v547_v14  ;;  %p610_p4 = pnand %p609_p3, %p603_p0 }
  0x40   :  { %551 = vmatprep.subr.msk.bf16.mxu0 %vm722_vm1, %v549_v15 }
  0x41   :  { %514 = vmatpush1.bf16.xpose.msra.mxu1 %v513_v23 }
  0x42   :  { %595 = vxpose.xlu0.b32.end [16/16] (narrow) %v594_v13, 8  ;;  %213 = vxpose.xlu1.b32.cont [15/16] (narrow) %v61_v16, 8 }
  0x43   :  { %516 = vmatprep.subr.bf16.mxu1 %v515_v27 }
  0x46   :  { %214 = vxpose.xlu1.b32.end [16/16] (narrow) %v62_v26, 8 }
  0x47   :  { %553 = vmatpush1.bf16.xpose.msra.mxu0 %v552_v28 }
  0x48   :  { %556 = vmatprep.subr.msk.bf16.mxu0 %vm722_vm1, %v554_v29 }
  0x49   :  { %518 = vmatpush1.bf16.xpose.msra.mxu1 %v517_v35 }
  0x4f   :  { %558 = vmatpush1.bf16.xpose.msra.mxu0 %v557_v36 }
  0x6b   :  { %601 = vset.pattern.permute.xlu0 %v626_v38 }
  0x6c   :  { %132 = vperm.xlu0 %601, %v129_v37  }
  0x82   :  { %v247_v31 = vpop.trf.xlu1 }
  0x83   :  { %486 = vmatprep.mubr.msk.f32.mxu0 %vm263_vm0, %v247_v31 }
  0x86   :  { %v596_v39 = vpop.trf.xlu0 }
  0x87   :  { %v597_v40 = vunpack.i.l.bf16 %v596_v39  ;;  %v600_v41 = vunpack.i.h.bf16 %v596_v39 }
  0x89   :  { %379 = vmatprep.mubr.f32.mxu1 %v597_v40 }
  0x8a   :  { %380 = vmatmul.mubr.f32.vlgmr.msra.gmra.mrb[0].mxu1 %v600_v41  ;;  %v215_v42 = vpop.trf.xlu1 }
  0x8b   :  { %450 = vmatmul.mubr.f32.vlgmr.msra.gmra.mrb[0].mxu0 %v215_v42 }
  0xeb   :  { %v133_v43 = vpop.permute.xlu0 %132 }
 0x15d   :  { %v381_v44 = vpop.f32.mrb[0].mxu1 }
 0x15e   :  { %v382_v45 = vadd.f32 %v381_v44, %v133_v43  ;;  %v383_v46 = vpop.f32.mrb[1].mxu1  ;;  %v451_v47 = vpop.f32.mrb[0].mxu0 }
 0x15f   :  { %v453_v49 = vpop.f32.mrb[1].mxu0 }
 0x160   :  { %v452_v48 = vadd.f32 %v451_v47, %v382_v45 }
 0x162   :  { %455 = vst [vmem:[#allocation2] sm:$0x3] %v452_v48 }
 0x163   :  { %613 = shalt.err (!%p610_p4)
}
 0x164   :  { %s614_s28 = scalar_lea.hbm %s1031_s3, 32 }
 0x165   :  { %p615_p5 = scmp.ne.s32.totalorder %s1031_s3, %s614_s28  ;;  %p618_p6 = scmp.lt.u32.totalorder %s614_s28, %s1031_s3 }
 0x167   :  { %p620_p7 = pnand %p618_p6, %p615_p5 }
 0x169   :  { %623 = shalt.err (!%p620_p7)
}
 0x16a   :  { %465 = dma.vmem_to_hbm [thread:$0]  %s463_s25, 32, %s1031_s3, [#allocation3]  }
 0x16b   :  { %624 = dma.done.wait [#allocation3], 32  }
 0x16c   :  { %625 = vsyncadd [#allocation3], 4294967264 }
 0x16d   :  { %469 = vsyncpa [#allocation3], 1 }

</bundles_post_ra>
